<compile_context>
chip_gen: v6e
topology: v6e:2x2x1
jax: 0.10.0
libtpu: 0.0.40
codegen_flags: <defaults>
</compile_context>

<pallas_src>
from functools import partial

import jax
import jax.numpy as jnp
from jax import lax
from jax.experimental import pallas as pl
from jax.experimental.pallas import tpu as pltpu


def _fused_mbconv_kernel(x_ref, we_ref, b1_ref, wp_ref, b2_ref, o_ref,
                         *, K, Wpad, Lb, pad, compute_dtype):
    # x_ref : (1, Cin, Fb)      padded, channel-major, spatially-flat input (f32)
    # we_ref: (K*K, Cexp, Cin)  expand-conv weights per tap, BN1 scale folded
    # b1_ref: (Cexp, 1)         folded BN1 bias (f32)
    # wp_ref: (Cout, Cexp)      1x1 project-conv weights, BN2 scale folded
    # b2_ref: (Cout, 1)         folded BN2 bias (f32)
    # o_ref : (1, Cout, Lb)     output, flattened spatial (lane-dense) last dim
    x = x_ref[0]                                         # (Cin, Fb), f32
    we = we_ref[...]                                     # (K*K, Cexp, Cin)
    cexp = we.shape[1]

    # 3x3 conv (stride 1, SAME padding) as K*K accumulated GEMMs over shifted
    # views of the flattened padded input; f32 accumulation on the MXU.
    acc = jnp.zeros((cexp, Lb), dtype=jnp.float32)
    for kh in range(K):
        for kw in range(K):
            off = kh * Wpad + kw
            tap = x[:, off:off + Lb].astype(compute_dtype)        # (Cin, Lb)
            acc = acc + jnp.dot(we[kh * K + kw], tap,
                                preferred_element_type=jnp.float32)

    # expand_conv: BN bias (scale folded into weights) + SiLU, in f32.
    h = acc + b1_ref[...]
    h = h * jax.nn.sigmoid(h)

    # project_conv: 1x1 conv + BN bias (Identity activation).
    y = jnp.dot(wp_ref[...], h.astype(compute_dtype),
                preferred_element_type=jnp.float32)
    y = y + b2_ref[...]

    # shortcut: DropPath is identity (eval / drop_rate=0). The residual is the
    # center tap of the f32 input (valid since Cin == Cout when has_shortcut).
    c = pad * Wpad + pad
    y = y + x[:, c:c + Lb]

    o_ref[0] = y.astype(o_ref.dtype)


def fused_mbconv(x_nchw, params, *, kernel_size=3, compute_dtype=jnp.bfloat16):
    """FusedMBConv forward (eval mode). x_nchw: (N, Cin, H, W) -> (N, Cout, H, W)."""
    w_e, g1, b1, m1, v1, w_p, g2, b2, m2, v2 = params
    eps = 1e-5
    N, Cin, H, W = x_nchw.shape
    Cexp = w_e.shape[0]
    Cout = w_p.shape[0]
    K = kernel_size
    pad = (K - 1) // 2
    Hp, Wp = H + 2 * pad, W + 2 * pad
    assert Cin == Cout, "shortcut path requires in_channels == out_channels"

    # Grid: one step everywhere except v7x (2 TensorCores/chip), where a 2-way
    # 'parallel' split over images keeps both cores busy.
    try:
        kind = jax.devices()[0].device_kind.lower()
    except Exception:
        kind = ""
    G = 2 if ("v7" in kind and N % 2 == 0) else 1
    NB = N // G                        # images per grid step
    Fb = NB * Hp * Wp                  # flat padded length per step
    max_off = (K - 1) * (Wp + 1)       # largest in-kernel tap shift
    Lb = Fb - max_off                  # columns computed per step (covers all valid)

    # ---- glue: layout + BN folding (plain JAX, fused under jit) ----
    # Padded, channel-major, spatially flattened input: (G, Cin, NB*Hp*Wp), f32
    # (kept f32 because it doubles as the residual; GEMM operands are cast to
    #  compute_dtype inside the kernel).
    x_pad = jnp.pad(x_nchw, ((0, 0), (0, 0), (pad, pad), (pad, pad)))
    x_cm = jnp.transpose(x_pad.reshape(G, NB, Cin, Hp * Wp), (0, 2, 1, 3))
    x_cm = x_cm.reshape(G, Cin, Fb).astype(jnp.float32)

    # Fold eval-mode BN scale into conv weights; keep only the bias vectors.
    inv1 = g1 * lax.rsqrt(v1 + eps)                                # (Cexp,)
    inv2 = g2 * lax.rsqrt(v2 + eps)                                # (Cout,)
    we = w_e * inv1[:, None, None, None]                           # (Cexp,Cin,K,K)
    we_taps = jnp.transpose(we, (2, 3, 0, 1)).reshape(K * K, Cexp, Cin)
    we_taps = we_taps.astype(compute_dtype)                        # (K*K,Cexp,Cin)
    wp = (w_p[:, :, 0, 0] * inv2[:, None]).astype(compute_dtype)   # (Cout,Cexp)
    b1f = (b1 - m1 * inv1).reshape(Cexp, 1).astype(jnp.float32)
    b2f = (b2 - m2 * inv2).reshape(Cout, 1).astype(jnp.float32)

    kernel = partial(_fused_mbconv_kernel, K=K, Wpad=Wp, Lb=Lb, pad=pad,
                     compute_dtype=compute_dtype)

    # TODO(synk): for real EfficientNetV2 shapes (H,W up to 112, C up to 96),
    # tile the flat spatial axis and set vmem_limit_bytes for v7x's 64 MiB VMEM.
    out_flat = pl.pallas_call(
        kernel,
        out_shape=jax.ShapeDtypeStruct((G, Cout, Lb), jnp.float32),
        grid=(G,),
        in_specs=[
            pl.BlockSpec((1, Cin, Fb), lambda g: (g, 0, 0)),
            pl.BlockSpec((K * K, Cexp, Cin), lambda g: (0, 0, 0)),
            pl.BlockSpec((Cexp, 1), lambda g: (0, 0)),
            pl.BlockSpec((Cout, Cexp), lambda g: (0, 0)),
            pl.BlockSpec((Cout, 1), lambda g: (0, 0)),
        ],
        out_specs=pl.BlockSpec((1, Cout, Lb), lambda g: (g, 0, 0)),
        compiler_params=pltpu.CompilerParams(
            dimension_semantics=("parallel",)),
    )(x_cm, we_taps, b1f, wp, b2f)

    # Drop the padding columns/rows and restore NCHW.
    y = jnp.pad(out_flat, ((0, 0), (0, 0), (0, Fb - Lb)))           # (G,Cout,Fb)
    y = y.reshape(G, Cout, NB, Hp, Wp)[:, :, :, :H, :W]             # valid pixels
    y = jnp.transpose(y, (0, 2, 1, 3, 4)).reshape(N, Cout, H, W)
    return y.astype(x_nchw.dtype)


def reference_fused_mbconv(x_nchw, params, *, kernel_size=3):
    """Pure-JAX reference matching the PyTorch forward (eval mode)."""
    w_e, g1, b1, m1, v1, w_p, g2, b2, m2, v2 = params
    eps = 1e-5
    pad = (kernel_size - 1) // 2
    dn = ("NCHW", "OIHW", "NCHW")

    def bn(y, g, b, m, v):
        return (y - m[None, :, None, None]) / jnp.sqrt(v + eps)[None, :, None, None] \
               * g[None, :, None, None] + b[None, :, None, None]

    y = lax.conv_general_dilated(x_nchw, w_e, (1, 1), [(pad, pad), (pad, pad)],
                                 dimension_numbers=dn)
    y = bn(y, g1, b1, m1, v1)
    y = y * jax.nn.sigmoid(y)                        # SiLU
    y = lax.conv_general_dilated(y, w_p, (1, 1), [(0, 0), (0, 0)],
                                 dimension_numbers=dn)
    y = bn(y, g2, b2, m2, v2)
    return y + x_nchw                                # shortcut (DropPath identity)


if __name__ == "__main__":
    # FusedMBConv(kernel_size=3, in_channels=4, out_channels=4,
    #             expand_ratio=4, stride=1, se_ratio=0, drop_rate=0.0)
    N, Cin, H, W = 2, 4, 16, 16
    expand_ratio, K = 4, 3
    Cexp, Cout = Cin * expand_ratio, Cin

    key = jax.random.PRNGKey(0)
    keys = jax.random.split(key, 8)

    x = jax.random.normal(keys[0], (N, Cin, H, W), dtype=jnp.float32)

    w_expand = 0.1 * jax.random.normal(keys[1], (Cexp, Cin, K, K), jnp.float32)
    gamma1 = 1.0 + 0.1 * jax.random.normal(keys[2], (Cexp,), jnp.float32)
    beta1 = 0.05 * jax.random.normal(keys[3], (Cexp,), jnp.float32)
    mean1 = 0.1 * jax.random.normal(keys[4], (Cexp,), jnp.float32)
    var1 = jax.random.uniform(keys[5], (Cexp,), jnp.float32, 0.5, 1.5)

    w_project = 0.1 * jax.random.normal(keys[6], (Cout, Cexp, 1, 1), jnp.float32)
    gamma2 = 1.0 + 0.1 * jax.random.normal(keys[7], (Cout,), jnp.float32)
    beta2 = jnp.linspace(-0.1, 0.1, Cout, dtype=jnp.float32)
    mean2 = jnp.linspace(-0.05, 0.05, Cout, dtype=jnp.float32)
    var2 = jnp.linspace(0.8, 1.2, Cout, dtype=jnp.float32)

    params = (w_expand, gamma1, beta1, mean1, var1,
              w_project, gamma2, beta2, mean2, var2)

    ref = jax.block_until_ready(reference_fused_mbconv(x, params, kernel_size=K))

    # f32 compute path: tight correctness check.
    f32_fwd = jax.jit(partial(fused_mbconv, kernel_size=K,
                              compute_dtype=jnp.float32))
    out_f32 = jax.block_until_ready(f32_fwd(x, params))
    assert out_f32.shape == (N, Cout, H, W)
    err32 = float(jnp.max(jnp.abs(out_f32 - ref)))
    assert err32 < 1e-3, f"f32 path max abs err {err32}"

    # bf16 GEMM-operand path (default): looser tolerance for bf16 rounding.
    bf16_fwd = jax.jit(partial(fused_mbconv, kernel_size=K,
                               compute_dtype=jnp.bfloat16))
    out = jax.block_until_ready(bf16_fwd(x, params))
    assert out.shape == (N, Cout, H, W)
    errbf = float(jnp.max(jnp.abs(out - ref)))
    assert errbf < 5e-2, f"bf16 path max abs err {errbf}"

    print("KERNEL_OK")
</pallas_src>

<mosaic_0001>
module attributes {stable_mosaic.version = 11 : i64} {
  func.func @_fused_mbconv_kernel(%arg0: i32, %arg1: memref<1x4x648xf32, #tpu.memory_space<vmem>>, %arg2: memref<9x16x4xf32, #tpu.memory_space<vmem>>, %arg3: memref<16x1xf32, #tpu.memory_space<vmem>>, %arg4: memref<4x16xf32, #tpu.memory_space<vmem>>, %arg5: memref<4x1xf32, #tpu.memory_space<vmem>>, %arg6: memref<1x4x610xf32, #tpu.memory_space<vmem>>) attributes {dimension_semantics = [#tpu.dimension_semantics<parallel>], iteration_bounds = array<i64: 1>, scalar_prefetch = 0 : i64, scratch_operands = 0 : i64, tpu.core_type = #tpu.core_type<tc>, window_params = [{transform_indices = @transform_0, window_bounds = array<i64: 1, 4, 648>}, {pipeline_mode = #tpu.pipeline_mode<synchronous>, transform_indices = @transform_1, window_bounds = array<i64: 9, 16, 4>}, {pipeline_mode = #tpu.pipeline_mode<synchronous>, transform_indices = @transform_2, window_bounds = array<i64: 16, 1>}, {pipeline_mode = #tpu.pipeline_mode<synchronous>, transform_indices = @transform_3, window_bounds = array<i64: 4, 16>}, {pipeline_mode = #tpu.pipeline_mode<synchronous>, transform_indices = @transform_4, window_bounds = array<i64: 4, 1>}, {transform_indices = @transform_5, window_bounds = array<i64: 1, 4, 610>}]} {
    %c0 = arith.constant 0 : index
    %c0_0 = arith.constant 0 : index
    %c0_1 = arith.constant 0 : index
    %0 = vector.load %arg1[%c0, %c0_0, %c0_1] : memref<1x4x648xf32, #tpu.memory_space<vmem>>, vector<1x4x648xf32>
    %1 = vector.shape_cast %0 : vector<1x4x648xf32> to vector<4x648xf32>
    %c0_2 = arith.constant 0 : index
    %c0_3 = arith.constant 0 : index
    %c0_4 = arith.constant 0 : index
    %2 = vector.load %arg2[%c0_2, %c0_3, %c0_4] : memref<9x16x4xf32, #tpu.memory_space<vmem>>, vector<9x16x4xf32>
    %cst = arith.constant 0.000000e+00 : f32
    %3 = vector.broadcast %cst : f32 to vector<16x610xf32>
    %4 = vector.extract_strided_slice %1 {offsets = [0, 0], sizes = [4, 610], strides = [1, 1]} : vector<4x648xf32> to vector<4x610xf32>
    %5 = vector.extract_strided_slice %2 {offsets = [0, 0, 0], sizes = [1, 16, 4], strides = [1, 1, 1]} : vector<9x16x4xf32> to vector<1x16x4xf32>
    %6 = vector.shape_cast %5 : vector<1x16x4xf32> to vector<16x4xf32>
    %cst_5 = arith.constant dense<0.000000e+00> : vector<16x610xf32>
    %7 = tpu.matmul %6, %4, %cst_5 {dimension_numbers = #tpu.dot_dimension_numbers<[1], [0], [0], [1], [0, 0, 1, 1], [], []>} : vector<16x4xf32>, vector<4x610xf32>, vector<16x610xf32> -> vector<16x610xf32>
    %8 = arith.addf %3, %7 : vector<16x610xf32>
    %9 = vector.extract_strided_slice %1 {offsets = [0, 1], sizes = [4, 610], strides = [1, 1]} : vector<4x648xf32> to vector<4x610xf32>
    %10 = vector.extract_strided_slice %2 {offsets = [1, 0, 0], sizes = [1, 16, 4], strides = [1, 1, 1]} : vector<9x16x4xf32> to vector<1x16x4xf32>
    %11 = vector.shape_cast %10 : vector<1x16x4xf32> to vector<16x4xf32>
    %cst_6 = arith.constant dense<0.000000e+00> : vector<16x610xf32>
    %12 = tpu.matmul %11, %9, %cst_6 {dimension_numbers = #tpu.dot_dimension_numbers<[1], [0], [0], [1], [0, 0, 1, 1], [], []>} : vector<16x4xf32>, vector<4x610xf32>, vector<16x610xf32> -> vector<16x610xf32>
    %13 = arith.addf %8, %12 : vector<16x610xf32>
    %14 = vector.extract_strided_slice %1 {offsets = [0, 2], sizes = [4, 610], strides = [1, 1]} : vector<4x648xf32> to vector<4x610xf32>
    %15 = vector.extract_strided_slice %2 {offsets = [2, 0, 0], sizes = [1, 16, 4], strides = [1, 1, 1]} : vector<9x16x4xf32> to vector<1x16x4xf32>
    %16 = vector.shape_cast %15 : vector<1x16x4xf32> to vector<16x4xf32>
    %cst_7 = arith.constant dense<0.000000e+00> : vector<16x610xf32>
    %17 = tpu.matmul %16, %14, %cst_7 {dimension_numbers = #tpu.dot_dimension_numbers<[1], [0], [0], [1], [0, 0, 1, 1], [], []>} : vector<16x4xf32>, vector<4x610xf32>, vector<16x610xf32> -> vector<16x610xf32>
    %18 = arith.addf %13, %17 : vector<16x610xf32>
    %19 = vector.extract_strided_slice %1 {offsets = [0, 18], sizes = [4, 610], strides = [1, 1]} : vector<4x648xf32> to vector<4x610xf32>
    %20 = vector.extract_strided_slice %2 {offsets = [3, 0, 0], sizes = [1, 16, 4], strides = [1, 1, 1]} : vector<9x16x4xf32> to vector<1x16x4xf32>
    %21 = vector.shape_cast %20 : vector<1x16x4xf32> to vector<16x4xf32>
    %cst_8 = arith.constant dense<0.000000e+00> : vector<16x610xf32>
    %22 = tpu.matmul %21, %19, %cst_8 {dimension_numbers = #tpu.dot_dimension_numbers<[1], [0], [0], [1], [0, 0, 1, 1], [], []>} : vector<16x4xf32>, vector<4x610xf32>, vector<16x610xf32> -> vector<16x610xf32>
    %23 = arith.addf %18, %22 : vector<16x610xf32>
    %24 = vector.extract_strided_slice %1 {offsets = [0, 19], sizes = [4, 610], strides = [1, 1]} : vector<4x648xf32> to vector<4x610xf32>
    %25 = vector.extract_strided_slice %2 {offsets = [4, 0, 0], sizes = [1, 16, 4], strides = [1, 1, 1]} : vector<9x16x4xf32> to vector<1x16x4xf32>
    %26 = vector.shape_cast %25 : vector<1x16x4xf32> to vector<16x4xf32>
    %cst_9 = arith.constant dense<0.000000e+00> : vector<16x610xf32>
    %27 = tpu.matmul %26, %24, %cst_9 {dimension_numbers = #tpu.dot_dimension_numbers<[1], [0], [0], [1], [0, 0, 1, 1], [], []>} : vector<16x4xf32>, vector<4x610xf32>, vector<16x610xf32> -> vector<16x610xf32>
    %28 = arith.addf %23, %27 : vector<16x610xf32>
    %29 = vector.extract_strided_slice %1 {offsets = [0, 20], sizes = [4, 610], strides = [1, 1]} : vector<4x648xf32> to vector<4x610xf32>
    %30 = vector.extract_strided_slice %2 {offsets = [5, 0, 0], sizes = [1, 16, 4], strides = [1, 1, 1]} : vector<9x16x4xf32> to vector<1x16x4xf32>
    %31 = vector.shape_cast %30 : vector<1x16x4xf32> to vector<16x4xf32>
    %cst_10 = arith.constant dense<0.000000e+00> : vector<16x610xf32>
    %32 = tpu.matmul %31, %29, %cst_10 {dimension_numbers = #tpu.dot_dimension_numbers<[1], [0], [0], [1], [0, 0, 1, 1], [], []>} : vector<16x4xf32>, vector<4x610xf32>, vector<16x610xf32> -> vector<16x610xf32>
    %33 = arith.addf %28, %32 : vector<16x610xf32>
    %34 = vector.extract_strided_slice %1 {offsets = [0, 36], sizes = [4, 610], strides = [1, 1]} : vector<4x648xf32> to vector<4x610xf32>
    %35 = vector.extract_strided_slice %2 {offsets = [6, 0, 0], sizes = [1, 16, 4], strides = [1, 1, 1]} : vector<9x16x4xf32> to vector<1x16x4xf32>
    %36 = vector.shape_cast %35 : vector<1x16x4xf32> to vector<16x4xf32>
    %cst_11 = arith.constant dense<0.000000e+00> : vector<16x610xf32>
    %37 = tpu.matmul %36, %34, %cst_11 {dimension_numbers = #tpu.dot_dimension_numbers<[1], [0], [0], [1], [0, 0, 1, 1], [], []>} : vector<16x4xf32>, vector<4x610xf32>, vector<16x610xf32> -> vector<16x610xf32>
    %38 = arith.addf %33, %37 : vector<16x610xf32>
    %39 = vector.extract_strided_slice %1 {offsets = [0, 37], sizes = [4, 610], strides = [1, 1]} : vector<4x648xf32> to vector<4x610xf32>
    %40 = vector.extract_strided_slice %2 {offsets = [7, 0, 0], sizes = [1, 16, 4], strides = [1, 1, 1]} : vector<9x16x4xf32> to vector<1x16x4xf32>
    %41 = vector.shape_cast %40 : vector<1x16x4xf32> to vector<16x4xf32>
    %cst_12 = arith.constant dense<0.000000e+00> : vector<16x610xf32>
    %42 = tpu.matmul %41, %39, %cst_12 {dimension_numbers = #tpu.dot_dimension_numbers<[1], [0], [0], [1], [0, 0, 1, 1], [], []>} : vector<16x4xf32>, vector<4x610xf32>, vector<16x610xf32> -> vector<16x610xf32>
    %43 = arith.addf %38, %42 : vector<16x610xf32>
    %44 = vector.extract_strided_slice %1 {offsets = [0, 38], sizes = [4, 610], strides = [1, 1]} : vector<4x648xf32> to vector<4x610xf32>
    %45 = vector.extract_strided_slice %2 {offsets = [8, 0, 0], sizes = [1, 16, 4], strides = [1, 1, 1]} : vector<9x16x4xf32> to vector<1x16x4xf32>
    %46 = vector.shape_cast %45 : vector<1x16x4xf32> to vector<16x4xf32>
    %cst_13 = arith.constant dense<0.000000e+00> : vector<16x610xf32>
    %47 = tpu.matmul %46, %44, %cst_13 {dimension_numbers = #tpu.dot_dimension_numbers<[1], [0], [0], [1], [0, 0, 1, 1], [], []>} : vector<16x4xf32>, vector<4x610xf32>, vector<16x610xf32> -> vector<16x610xf32>
    %48 = arith.addf %43, %47 : vector<16x610xf32>
    %c0_14 = arith.constant 0 : index
    %c0_15 = arith.constant 0 : index
    %49 = vector.load %arg3[%c0_14, %c0_15] : memref<16x1xf32, #tpu.memory_space<vmem>>, vector<16x1xf32>
    %50 = vector.broadcast %49 : vector<16x1xf32> to vector<16x610xf32>
    %51 = arith.addf %48, %50 : vector<16x610xf32>
    %52 = arith.negf %51 : vector<16x610xf32>
    %53 = math.exp %52 : vector<16x610xf32>
    %cst_16 = arith.constant 1.000000e+00 : f32
    %54 = vector.broadcast %cst_16 : f32 to vector<16x610xf32>
    %55 = arith.addf %54, %53 : vector<16x610xf32>
    %56 = arith.divf %54, %55 : vector<16x610xf32>
    %57 = arith.mulf %51, %56 : vector<16x610xf32>
    %c0_17 = arith.constant 0 : index
    %c0_18 = arith.constant 0 : index
    %58 = vector.load %arg4[%c0_17, %c0_18] : memref<4x16xf32, #tpu.memory_space<vmem>>, vector<4x16xf32>
    %cst_19 = arith.constant dense<0.000000e+00> : vector<4x610xf32>
    %59 = tpu.matmul %58, %57, %cst_19 {dimension_numbers = #tpu.dot_dimension_numbers<[1], [0], [0], [1], [0, 0, 1, 1], [], []>} : vector<4x16xf32>, vector<16x610xf32>, vector<4x610xf32> -> vector<4x610xf32>
    %c0_20 = arith.constant 0 : index
    %c0_21 = arith.constant 0 : index
    %60 = vector.load %arg5[%c0_20, %c0_21] : memref<4x1xf32, #tpu.memory_space<vmem>>, vector<4x1xf32>
    %61 = vector.broadcast %60 : vector<4x1xf32> to vector<4x610xf32>
    %62 = arith.addf %59, %61 : vector<4x610xf32>
    %63 = vector.extract_strided_slice %1 {offsets = [0, 19], sizes = [4, 610], strides = [1, 1]} : vector<4x648xf32> to vector<4x610xf32>
    %64 = arith.addf %62, %63 : vector<4x610xf32>
    %c0_22 = arith.constant 0 : index
    %c0_23 = arith.constant 0 : index
    %c0_24 = arith.constant 0 : index
    %65 = vector.load %arg6[%c0_22, %c0_23, %c0_24] : memref<1x4x610xf32, #tpu.memory_space<vmem>>, vector<1x4x610xf32>
    %66 = vector.shape_cast %65 : vector<1x4x610xf32> to vector<4x610xf32>
    %67 = vector.shape_cast %64 : vector<4x610xf32> to vector<1x4x610xf32>
    tpu.vector_store %arg6[%c0_22, %c0_23, %c0_24], %67 {strides = array<i32>} : memref<1x4x610xf32, #tpu.memory_space<vmem>>, vector<1x4x610xf32>,
    return
  }
  func.func @transform_0(%arg0: i32) -> (i32, i32, i32) {
    %c0_i32 = arith.constant 0 : i32
    %c0_i32_0 = arith.constant 0 : i32
    %c0_i32_1 = arith.constant 0 : i32
    return %arg0, %c0_i32, %c0_i32_0 : i32, i32, i32
  }
  func.func @transform_1(%arg0: i32) -> (i32, i32, i32) {
    %c0_i32 = arith.constant 0 : i32
    %c0_i32_0 = arith.constant 0 : i32
    %c0_i32_1 = arith.constant 0 : i32
    %c0_i32_2 = arith.constant 0 : i32
    return %c0_i32, %c0_i32_0, %c0_i32_1 : i32, i32, i32
  }
  func.func @transform_2(%arg0: i32) -> (i32, i32) {
    %c0_i32 = arith.constant 0 : i32
    %c0_i32_0 = arith.constant 0 : i32
    %c0_i32_1 = arith.constant 0 : i32
    return %c0_i32, %c0_i32_0 : i32, i32
  }
  func.func @transform_3(%arg0: i32) -> (i32, i32) {
    %c0_i32 = arith.constant 0 : i32
    %c0_i32_0 = arith.constant 0 : i32
    %c0_i32_1 = arith.constant 0 : i32
    return %c0_i32, %c0_i32_0 : i32, i32
  }
  func.func @transform_4(%arg0: i32) -> (i32, i32) {
    %c0_i32 = arith.constant 0 : i32
    %c0_i32_0 = arith.constant 0 : i32
    %c0_i32_1 = arith.constant 0 : i32
    return %c0_i32, %c0_i32_0 : i32, i32
  }
  func.func @transform_5(%arg0: i32) -> (i32, i32, i32) {
    %c0_i32 = arith.constant 0 : i32
    %c0_i32_0 = arith.constant 0 : i32
    %c0_i32_1 = arith.constant 0 : i32
    return %arg0, %c0_i32, %c0_i32_0 : i32, i32, i32
  }
}

</mosaic_0001>

<bundles_post_ra>
// kernel: fused_mbconv.1
= control target key start
LH: loop header
LB: loop body
LE: loop exit
PB: predicated region body
PF: predicated region fallthrough
CT: control target
= control target key end

     0   :  { %v3582_v2 = vmov 0.0   ;;  %s3045_s22 = smov 127   ;;  %s3046_s25 = smov 126   ;;  %v3053_v7 = vmov 0   ;;  %vm68_vm0 = vcmask 1043456   ;;  %vm56_vm1 = vcmask 1039360   ;;  %s3576_s0 = inlined_call_operand.vmem [shape: f32[1,4,648], index: 0, kind: input, shape index: {}]   ;;  %s3577_s2 = inlined_call_operand.vmem [shape: f32[16,1], index: 2, kind: input, shape index: {}]   ;;  %s3578_s4 = inlined_call_operand.vmem [shape: f32[4,1], index: 4, kind: input, shape index: {}]   ;;  %s3579_s1 = inlined_call_operand.vmem [shape: f32[9,16,4], index: 1, kind: input, shape index: {}]   ;;  %s3580_s3 = inlined_call_operand.vmem [shape: f32[4,16], index: 3, kind: input, shape index: {}]   ;;  %s3581_s5 = inlined_call_operand.vmem [shape: f32[1,4,610], index: 5, kind: output, shape index: {}]  }
   0x1   :  { %v3088_v0 = vld [vmem:[%s3576_s0 + $0x8] sm:$0xff]  ;;  %v3093_v1 = vld [vmem:[%s3576_s0] sm:$0xff]  ;;  %220 = vmatprep.mubr.f32.mxu1 %v3582_v2  ;;  %143 = vmatprep.mubr.f32.mxu0 %v3582_v2  ;;  %v3110_v5 = vld [vmem:[%s3576_s0 + $0x10] sm:$0xff]  ;;  %s3047_s26 = smov 110   ;;  %s3048_s0 = smov 109   ;;  %vm61_vm2 = vcmask 31744  }
   0x2   :  { %50 = vrot.lane.b32.xlu0 %v3088_v0, %s3045_s22  ;;  %v3100_v3 = vcombine.high %v3088_v0, %v3088_v0  ;;  %v3104_v4 = vcombine.high %v3093_v1, %v3093_v1  ;;  %s3049_s27 = smov 108   ;;  %s3050_s28 = smov 92   ;;  %v1633_v6 = vcombine.high %v3110_v5, %v3110_v5  ;;  %v2453_v8 = vld [vmem:[%s3577_s2] sm:$0xff]  ;;  %2999 = vset.pattern.permute.xlu1 %v3053_v7  ;;  %v2454_v9 = vld [vmem:[%s3577_s2 + $0x8] sm:$0xff]  ;;  %v25_v17 = vld [vmem:[%s3579_s1 + $0x10] sm:$0xff]  ;;  %vm563_vm3 = vcmask 1031168  }
   0x3   :  { %s3051_s29 = smov 91   ;;  %s3052_s30 = smov 90   ;;  %3000 = vset.pattern.permute.xlu0 %v3053_v7  ;;  %v2546_v10 = vld [vmem:[%s3578_s4] sm:$0xf]  ;;  %v26_v22 = vld [vmem:[%s3579_s1 + $0x18] sm:$0xff]  ;;  %v24_v29 = vld [vmem:[%s3579_s1 + $0x8] sm:$0xff] }
   0x4   :  { %52 = vrot.lane.b32.xlu1 %v3100_v3, %s3045_s22  ;;  %v23_v25 = vld [vmem:[%s3579_s1] sm:$0xff]  ;;  %vm833_vm4 = vcmask 900096   ;;  %v28_v43 = vld [vmem:[%s3579_s1 + $0x28] sm:$0xff]  ;;  %v29_v46 = vld [vmem:[%s3579_s1 + $0x30] sm:$0xff]  ;;  %vm1103_vm5 = vcmask 891904   ;;  %vm1373_vm6 = vcmask 883712  }
   0x5   :  { %v27_v38 = vld [vmem:[%s3579_s1 + $0x20] sm:$0xff]  ;;  %v30_v51 = vld [vmem:[%s3579_s1 + $0x38] sm:$0xff]  ;;  %vm1646_vm7 = vcmask 752640   ;;  %vm1919_vm8 = vcmask 744448   ;;  %vm2192_vm9 = vcmask 736256   ;;  %vm2552_vm10 = vcmask 130048  }
   0x6   :  { %48 = vrot.lane.b32.xlu0 %v3104_v4, %s3045_s22  ;;  %v31_v60 = vld [vmem:[%s3579_s1 + $0x40] sm:$0xff]  ;;  %vm3054_vm11 = vmmov 0   ;;  %vm2788_vm12 = vcmask 797696  }
   0x8   :  { %54 = vrot.lane.b32.xlu1 %v3110_v5, %s3045_s22 }
   0xa   :  { %46 = vrot.lane.b32.xlu0 %v3093_v1, %s3045_s22 }
   0xc   :  { %555 = vrot.lane.b32.xlu1 %v3104_v4, %s3046_s25 }
   0xe   :  { %557 = vrot.lane.b32.xlu0 %v3088_v0, %s3046_s25 }
  0x10   :  { %559 = vrot.lane.b32.xlu1 %v3100_v3, %s3046_s25 }
  0x12   :  { %561 = vrot.lane.b32.xlu0 %v3110_v5, %s3046_s25 }
  0x14   :  { %553 = vrot.lane.b32.xlu1 %v3093_v1, %s3046_s25 }
  0x16   :  { %825 = vrot.lane.b32.xlu0 %v3104_v4, %s3047_s26 }
  0x18   :  { %827 = vrot.lane.b32.xlu1 %v3088_v0, %s3047_s26 }
  0x1a   :  { %823 = vrot.lane.b32.xlu0 %v3093_v1, %s3047_s26 }
  0x1c   :  { %829 = vrot.lane.b32.xlu1 %v3100_v3, %s3047_s26 }
  0x1e   :  { %831 = vrot.lane.b32.xlu0 %v3110_v5, %s3047_s26 }
  0x20   :  { %1095 = vrot.lane.b32.xlu1 %v3104_v4, %s3048_s0 }
  0x22   :  { %1097 = vrot.lane.b32.xlu0 %v3088_v0, %s3048_s0 }
  0x24   :  { %1099 = vrot.lane.b32.xlu1 %v3100_v3, %s3048_s0 }
  0x26   :  { %1101 = vrot.lane.b32.xlu0 %v3110_v5, %s3048_s0 }
  0x28   :  { %1093 = vrot.lane.b32.xlu1 %v3093_v1, %s3048_s0 }
  0x2a   :  { %1365 = vrot.lane.b32.xlu0 %v3104_v4, %s3049_s27 }
  0x2c   :  { %1367 = vrot.lane.b32.xlu1 %v3088_v0, %s3049_s27 }
  0x2e   :  { %1363 = vrot.lane.b32.xlu0 %v3093_v1, %s3049_s27 }
  0x30   :  { %1369 = vrot.lane.b32.xlu1 %v3100_v3, %s3049_s27 }
  0x32   :  { %1371 = vrot.lane.b32.xlu0 %v3110_v5, %s3049_s27 }
  0x34   :  { %1636 = vrot.lane.b32.xlu1 %v3104_v4, %s3050_s28 }
  0x36   :  { %1638 = vrot.lane.b32.xlu0 %v3088_v0, %s3050_s28 }
  0x38   :  { %1640 = vrot.lane.b32.xlu1 %v3100_v3, %s3050_s28 }
  0x3a   :  { %1642 = vrot.lane.b32.xlu0 %v3110_v5, %s3050_s28 }
  0x3c   :  { %1634 = vrot.lane.b32.xlu1 %v3093_v1, %s3050_s28 }
  0x3e   :  { %1644 = vrot.lane.b32.xlu0 %v1633_v6, %s3050_s28 }
  0x40   :  { %1909 = vrot.lane.b32.xlu1 %v3104_v4, %s3051_s29 }
  0x42   :  { %1911 = vrot.lane.b32.xlu0 %v3088_v0, %s3051_s29 }
  0x44   :  { %1907 = vrot.lane.b32.xlu1 %v3093_v1, %s3051_s29 }
  0x46   :  { %1913 = vrot.lane.b32.xlu0 %v3100_v3, %s3051_s29 }
  0x48   :  { %1915 = vrot.lane.b32.xlu1 %v3110_v5, %s3051_s29 }
  0x4a   :  { %1917 = vrot.lane.b32.xlu0 %v1633_v6, %s3051_s29 }
  0x4c   :  { %2182 = vrot.lane.b32.xlu1 %v3104_v4, %s3052_s30 }
  0x4e   :  { %2184 = vrot.lane.b32.xlu0 %v3088_v0, %s3052_s30 }
  0x50   :  { %2186 = vrot.lane.b32.xlu1 %v3100_v3, %s3052_s30 }
  0x52   :  { %2188 = vrot.lane.b32.xlu0 %v3110_v5, %s3052_s30 }
  0x54   :  { %2180 = vrot.lane.b32.xlu1 %v3093_v1, %s3052_s30 }
  0x56   :  { %2190 = vrot.lane.b32.xlu0 %v1633_v6, %s3052_s30 }
  0x58   :  { %2462 = vperm.xlu1 %2999, %v2454_v9  }
  0x5a   :  { %2457 = vperm.xlu0 %3000, %v2453_v8  }
  0x5c   :  { %2549 = vperm.xlu1 %2999, %v2546_v10   ;;  %v34_v10 = vld [vmem:[%s3579_s1 + $0x58] sm:$0xff] }
  0x74   :  { %v51_v11 = vpop.permute.xlu0 %50 }
  0x76   :  { %v53_v12 = vpop.permute.xlu1 %52 }
  0x77   :  { %v59_v19 = vsel %vm56_vm1, %v51_v11, %v53_v12 }
  0x78   :  { %v49_v13 = vpop.permute.xlu0 %48 }
  0x79   :  { %v58_v14 = vsel %vm56_vm1, %v49_v13, %v51_v11 }
  0x7a   :  { %v55_v15 = vpop.permute.xlu1 %54  ;;  %2794 = vmatprep.subr.msk.mxu0 %vm68_vm0, %v58_v14 }
  0x7b   :  { %v60_v16 = vsel %vm56_vm1, %v53_v12, %v55_v15 }
  0x7c   :  { %2798 = vmatprep.subr.msk.mxu1 %vm68_vm0, %v60_v16  ;;  %v47_v18 = vpop.permute.xlu0 %46 }
  0x7d   :  { %2799 = vmatpush1.msk.msra.mxu1 %vm68_vm0, %v59_v19  ;;  %v57_v20 = vsel %vm56_vm1, %v47_v18, %v49_v13 }
  0x7e   :  { %2800 = vmatmul.mubr.msk.f32.vlgmr.msra.gmra.mxu1 %vm61_vm2, %v25_v17  ;;  %v556_v21 = vpop.permute.xlu1 %555  ;;  %2795 = vmatpush1.msk.msra.mxu0 %vm68_vm0, %v57_v20  ;;  %v35_v20 = vld [vmem:[%s3579_s1 + $0x60] sm:$0xff] }
  0x7f   :  { %2796 = vmatmul.mubr.msk.f32.vlgmr.msra.gmra.mxu0 %vm61_vm2, %v25_v17  ;;  %2936 = vmatprep.subr.msk.mxu0 %vm68_vm0, %v55_v15 }
  0x80   :  { %2937 = vmatpush3.msk.msra.mxu0 %vm68_vm0, %v55_v15  ;;  %226 = vmatprep.mubr.f32.mxu1 %v3582_v2  ;;  %v558_v23 = vpop.permute.xlu0 %557 }
  0x81   :  { %149 = vmatprep.mubr.f32.mxu0 %v3582_v2  ;;  %2805 = vmatprep.subr.msk.mxu1 %vm68_vm0, %v3104_v4  ;;  %v565_v30 = vsel %vm563_vm3, %v556_v21, %v558_v23 }
  0x82   :  { %2801 = vmatmul.mubr.msk.f32.gmra.mxu1 %vm61_vm2, %v26_v22  ;;  %v560_v24 = vpop.permute.xlu1 %559  ;;  %2809 = vmatprep.subr.msk.mxu0 %vm68_vm0, %v3100_v3 }
  0x83   :  { %2797 = vmatmul.mubr.msk.f32.gmra.mxu0 %vm61_vm2, %v26_v22  ;;  %2806 = vmatpush1.msk.msra.mxu1 %vm68_vm0, %v3093_v1  ;;  %v566_v36 = vsel %vm563_vm3, %v558_v23, %v560_v24  ;;  %v32_v1 = vld [vmem:[%s3579_s1 + $0x48] sm:$0xff] }
  0x84   :  { %388 = vmatprep.mubr.f32.mxu1 %v3582_v2  ;;  %2938 = vmatprep.mubr.msk.f32.mxu0 %vm61_vm2, %v25_v17  ;;  %v562_v26 = vpop.permute.xlu0 %561 }
  0x85   :  { %2941 = vmatprep.subr.msk.mxu1 %vm68_vm0, %v3110_v5  ;;  %v567_v27 = vsel %vm563_vm3, %v560_v24, %v562_v26 }
  0x86   :  { %v554_v28 = vpop.permute.xlu1 %553  ;;  %2807 = vmatmul.mubr.msk.f32.vlgmr.msra.gmra.mxu1 %vm61_vm2, %v23_v25 }
  0x87   :  { %2939 = vmatmul.mubr.msk.f32.vlgmr.msra.gmra.mxu0 %vm61_vm2, %v26_v22  ;;  %2942 = vmatpush3.msk.msra.mxu1 %vm68_vm0, %v3110_v5  ;;  %v564_v33 = vsel %vm563_vm3, %v554_v28, %v556_v21  ;;  %v33_v5 = vld [vmem:[%s3579_s1 + $0x50] sm:$0xff] }
  0x88   :  { %2810 = vmatpush1.msk.msra.mxu0 %vm68_vm0, %v3088_v0  ;;  %2820 = vmatprep.subr.msk.mxu1 %vm68_vm0, %v567_v27  ;;  %v826_v31 = vpop.permute.xlu0 %825 }
  0x89   :  { %2816 = vmatprep.subr.msk.mxu0 %vm68_vm0, %v565_v30  ;;  %394 = vmatprep.mubr.f32.mxu1 %v3582_v2 }
  0x8a   :  { %v828_v32 = vpop.permute.xlu1 %827  ;;  %465 = vmatprep.mubr.f32.mxu0 %v3582_v2  ;;  %2808 = vmatmul.mubr.msk.f32.gmra.mxu1 %vm61_vm2, %v24_v29 }
  0x8b   :  { %2811 = vmatmul.mubr.msk.f32.vlgmr.msra.gmra.mxu0 %vm61_vm2, %v23_v25  ;;  %2943 = vmatprep.mubr.msk.f32.mxu1 %vm61_vm2, %v23_v25  ;;  %v835_v35 = vsel %vm833_vm4, %v826_v31, %v828_v32  ;;  %v36_v25 = vld [vmem:[%s3579_s1 + $0x68] sm:$0xff] }
  0x8c   :  { %2817 = vmatpush1.msk.msra.mxu0 %vm68_vm0, %v564_v33  ;;  %471 = vmatprep.mubr.f32.mxu0 %v3582_v2  ;;  %v824_v34 = vpop.permute.xlu0 %823 }
  0x8d   :  { %2946 = vmatprep.subr.msk.mxu0 %vm68_vm0, %v562_v26  ;;  %v834_v39 = vsel %vm833_vm4, %v824_v34, %v826_v31  ;;  %v38_v34 = vld [vmem:[%s3579_s1 + $0x78] sm:$0xff] }
  0x8e   :  { %v830_v37 = vpop.permute.xlu1 %829  ;;  %2944 = vmatmul.mubr.msk.f32.vlgmr.msra.gmra.mxu1 %vm61_vm2, %v24_v29 }
  0x8f   :  { %2821 = vmatpush1.msk.msra.mxu1 %vm68_vm0, %v566_v36  ;;  %2812 = vmatmul.mubr.msk.f32.gmra.mxu0 %vm61_vm2, %v24_v29  ;;  %v836_v50 = vsel %vm833_vm4, %v828_v32, %v830_v37  ;;  %v37_v29 = vld [vmem:[%s3579_s1 + $0x70] sm:$0xff] }
  0x90   :  { %2827 = vmatprep.subr.msk.mxu1 %vm68_vm0, %v835_v35  ;;  %725 = vmatprep.mubr.f32.mxu1 %v3582_v2  ;;  %v832_v40 = vpop.permute.xlu0 %831 }
  0x91   :  { %648 = vmatprep.mubr.f32.mxu0 %v3582_v2  ;;  %v837_v42 = vsel %vm833_vm4, %v830_v37, %v832_v40 }
  0x92   :  { %v1096_v41 = vpop.permute.xlu1 %1095  ;;  %2822 = vmatmul.mubr.msk.f32.vlgmr.msra.gmra.mxu1 %vm61_vm2, %v27_v38 }
  0x93   :  { %2818 = vmatmul.mubr.msk.f32.vlgmr.msra.gmra.mxu0 %vm61_vm2, %v27_v38  ;;  %2828 = vmatpush1.msk.msra.mxu1 %vm68_vm0, %v834_v39 }
  0x94   :  { %2947 = vmatpush3.msk.msra.mxu0 %vm68_vm0, %v562_v26  ;;  %731 = vmatprep.mubr.f32.mxu1 %v3582_v2  ;;  %v1098_v44 = vpop.permute.xlu0 %1097 }
  0x95   :  { %2831 = vmatprep.subr.msk.mxu0 %vm68_vm0, %v837_v42  ;;  %654 = vmatprep.mubr.f32.mxu0 %v3582_v2  ;;  %v3259_v52 = vsel %vm1103_vm5, %v1096_v41, %v1098_v44  ;;  %v39_v42 = vld [vmem:[%s3579_s1 + $0x80] sm:$0xff] }
  0x96   :  { %v1100_v45 = vpop.permute.xlu1 %1099  ;;  %2823 = vmatmul.mubr.msk.f32.gmra.mxu1 %vm61_vm2, %v28_v43  ;;  %2951 = vmatprep.subr.msk.mxu1 %vm68_vm0, %v832_v40  ;;  %3591 = vst [vmem:[#allocation4_spill] sm:$0xff] %v3259_v52 }
  0x97   :  { %2819 = vmatmul.mubr.msk.f32.gmra.mxu0 %vm61_vm2, %v28_v43  ;;  %918 = vmatprep.mubr.f32.mxu1 %v3582_v2  ;;  %v3281_v58 = vsel %vm1103_vm5, %v1098_v44, %v1100_v45 }
  0x98   :  { %2948 = vmatprep.mubr.msk.f32.mxu0 %vm61_vm2, %v27_v38  ;;  %v3245_v47 = vpop.permute.xlu0 %1101  ;;  %3593 = vst [vmem:[#allocation6_spill] sm:$0xff] %v3281_v58 }
  0x99   :  { %3589 = vst [vmem:[#allocation2_spill] sm:$0xff] %v3245_v47  ;;  %v3249_v48 = vsel %vm1103_vm5, %v1100_v45, %v3245_v47 }
  0x9a   :  { %3590 = vst [vmem:[#allocation3_spill] sm:$0xff] %v3249_v48  ;;  %v1094_v49 = vpop.permute.xlu1 %1093  ;;  %2829 = vmatmul.mubr.msk.f32.vlgmr.msra.gmra.mxu1 %vm61_vm2, %v29_v46 }
  0x9b   :  { %2952 = vmatpush3.msk.msra.mxu1 %vm68_vm0, %v832_v40  ;;  %2949 = vmatmul.mubr.msk.f32.vlgmr.msra.gmra.mxu0 %vm61_vm2, %v28_v43  ;;  %v3270_v55 = vsel %vm1103_vm5, %v1094_v49, %v1096_v41  ;;  %v40_v43 = vld [vmem:[%s3579_s1 + $0x88] sm:$0xff] }
  0x9c   :  { %2832 = vmatpush1.msk.msra.mxu0 %vm68_vm0, %v836_v50  ;;  %2842 = vmatprep.subr.msk.mxu1 %vm68_vm0, %v3249_v48  ;;  %v1366_v53 = vpop.permute.xlu0 %1365  ;;  %3592 = vst [vmem:[#allocation5_spill] sm:$0xff] %v3270_v55 }
  0x9d   :  { %2838 = vmatprep.subr.msk.mxu0 %vm68_vm0, %v3259_v52  ;;  %924 = vmatprep.mubr.f32.mxu1 %v3582_v2 }
  0x9e   :  { %v1368_v54 = vpop.permute.xlu1 %1367  ;;  %995 = vmatprep.mubr.f32.mxu0 %v3582_v2  ;;  %2830 = vmatmul.mubr.msk.f32.gmra.mxu1 %vm61_vm2, %v30_v51 }
  0x9f   :  { %2833 = vmatmul.mubr.msk.f32.vlgmr.msra.gmra.mxu0 %vm61_vm2, %v29_v46  ;;  %2953 = vmatprep.mubr.msk.f32.mxu1 %vm61_vm2, %v29_v46  ;;  %v1375_v57 = vsel %vm1373_vm6, %v1366_v53, %v1368_v54 }
  0xa0   :  { %2839 = vmatpush1.msk.msra.mxu0 %vm68_vm0, %v3270_v55  ;;  %1001 = vmatprep.mubr.f32.mxu0 %v3582_v2  ;;  %v1364_v56 = vpop.permute.xlu0 %1363 }
  0xa1   :  { %2956 = vmatprep.subr.msk.mxu0 %vm68_vm0, %v3245_v47  ;;  %v1374_v61 = vsel %vm1373_vm6, %v1364_v56, %v1366_v53 }
  0xa2   :  { %v1370_v59 = vpop.permute.xlu1 %1369  ;;  %2954 = vmatmul.mubr.msk.f32.vlgmr.msra.gmra.mxu1 %vm61_vm2, %v30_v51 }
  0xa3   :  { %2843 = vmatpush1.msk.msra.mxu1 %vm68_vm0, %v3281_v58  ;;  %2834 = vmatmul.mubr.msk.f32.gmra.mxu0 %vm61_vm2, %v30_v51  ;;  %v1376_v9 = vsel %vm1373_vm6, %v1368_v54, %v1370_v59 }
  0xa4   :  { %2849 = vmatprep.subr.msk.mxu1 %vm68_vm0, %v1375_v57  ;;  %1265 = vmatprep.mubr.f32.mxu1 %v3582_v2  ;;  %v1372_v62 = vpop.permute.xlu0 %1371 }
  0xa5   :  { %1188 = vmatprep.mubr.f32.mxu0 %v3582_v2  ;;  %v1377_v0 = vsel %vm1373_vm6, %v1370_v59, %v1372_v62 }
  0xa6   :  { %v1637_v63 = vpop.permute.xlu1 %1636  ;;  %2844 = vmatmul.mubr.msk.f32.vlgmr.msra.gmra.mxu1 %vm61_vm2, %v31_v60 }
  0xa7   :  { %2840 = vmatmul.mubr.msk.f32.vlgmr.msra.gmra.mxu0 %vm61_vm2, %v31_v60  ;;  %2850 = vmatpush1.msk.msra.mxu1 %vm68_vm0, %v1374_v61 }
  0xa8   :  { %2957 = vmatpush3.msk.msra.mxu0 %vm68_vm0, %v3245_v47  ;;  %1271 = vmatprep.mubr.f32.mxu1 %v3582_v2  ;;  %v1639_v3 = vpop.permute.xlu0 %1638 }
  0xa9   :  { %2853 = vmatprep.subr.msk.mxu0 %vm68_vm0, %v1377_v0  ;;  %1194 = vmatprep.mubr.f32.mxu0 %v3582_v2  ;;  %v1648_v11 = vsel %vm1646_vm7, %v1637_v63, %v1639_v3 }
  0xaa   :  { %v1641_v4 = vpop.permute.xlu1 %1640  ;;  %2845 = vmatmul.mubr.msk.f32.gmra.mxu1 %vm61_vm2, %v32_v1  ;;  %2961 = vmatprep.subr.msk.mxu1 %vm68_vm0, %v1372_v62 }
  0xab   :  { %2841 = vmatmul.mubr.msk.f32.gmra.mxu0 %vm61_vm2, %v32_v1  ;;  %1458 = vmatprep.mubr.f32.mxu1 %v3582_v2  ;;  %v1649_v18 = vsel %vm1646_vm7, %v1639_v3, %v1641_v4 }
  0xac   :  { %2958 = vmatprep.mubr.msk.f32.mxu0 %vm61_vm2, %v31_v60  ;;  %v1643_v6 = vpop.permute.xlu0 %1642 }
  0xad   :  { %v1650_v7 = vsel %vm1646_vm7, %v1641_v4, %v1643_v6 }
  0xae   :  { %v1635_v8 = vpop.permute.xlu1 %1634  ;;  %2851 = vmatmul.mubr.msk.f32.vlgmr.msra.gmra.mxu1 %vm61_vm2, %v33_v5 }
  0xaf   :  { %2962 = vmatpush3.msk.msra.mxu1 %vm68_vm0, %v1372_v62  ;;  %2959 = vmatmul.mubr.msk.f32.vlgmr.msra.gmra.mxu0 %vm61_vm2, %v32_v1  ;;  %v1647_v15 = vsel %vm1646_vm7, %v1635_v8, %v1637_v63 }
  0xb0   :  { %2854 = vmatpush1.msk.msra.mxu0 %vm68_vm0, %v1376_v9  ;;  %2864 = vmatprep.subr.msk.mxu1 %vm68_vm0, %v1650_v7  ;;  %v1645_v12 = vpop.permute.xlu0 %1644 }
  0xb1   :  { %2860 = vmatprep.subr.msk.mxu0 %vm68_vm0, %v1648_v11  ;;  %1464 = vmatprep.mubr.f32.mxu1 %v3582_v2  ;;  %v1651_v14 = vsel %vm1646_vm7, %v1643_v6, %v1645_v12 }
  0xb2   :  { %v1910_v13 = vpop.permute.xlu1 %1909  ;;  %1535 = vmatprep.mubr.f32.mxu0 %v3582_v2  ;;  %2852 = vmatmul.mubr.msk.f32.gmra.mxu1 %vm61_vm2, %v34_v10 }
  0xb3   :  { %2855 = vmatmul.mubr.msk.f32.vlgmr.msra.gmra.mxu0 %vm61_vm2, %v33_v5  ;;  %2963 = vmatprep.mubr.msk.f32.mxu1 %vm61_vm2, %v33_v5 }
  0xb4   :  { %2861 = vmatpush1.msk.msra.mxu0 %vm68_vm0, %v1647_v15  ;;  %1541 = vmatprep.mubr.f32.mxu0 %v3582_v2  ;;  %v1912_v16 = vpop.permute.xlu0 %1911 }
  0xb5   :  { %v1921_v17 = vsel %vm1919_vm8, %v1910_v13, %v1912_v16  ;;  %2966 = vmatprep.subr.msk.mxu0 %vm68_vm0, %v1651_v14 }
  0xb6   :  { %v1908_v19 = vpop.permute.xlu1 %1907  ;;  %2964 = vmatmul.mubr.msk.f32.vlgmr.msra.gmra.mxu1 %vm61_vm2, %v34_v10 }
  0xb7   :  { %2865 = vmatpush1.msk.msra.mxu1 %vm68_vm0, %v1649_v18  ;;  %2856 = vmatmul.mubr.msk.f32.gmra.mxu0 %vm61_vm2, %v34_v10  ;;  %v1920_v21 = vsel %vm1919_vm8, %v1908_v19, %v1910_v13 }
  0xb8   :  { %2871 = vmatprep.subr.msk.mxu1 %vm68_vm0, %v1921_v17  ;;  %1809 = vmatprep.mubr.f32.mxu1 %v3582_v2  ;;  %v1914_v22 = vpop.permute.xlu0 %1913 }
  0xb9   :  { %1732 = vmatprep.mubr.f32.mxu0 %v3582_v2  ;;  %v1922_v33 = vsel %vm1919_vm8, %v1912_v16, %v1914_v22 }
  0xba   :  { %v1916_v23 = vpop.permute.xlu1 %1915  ;;  %2866 = vmatmul.mubr.msk.f32.vlgmr.msra.gmra.mxu1 %vm61_vm2, %v35_v20 }
  0xbb   :  { %v1923_v24 = vsel %vm1919_vm8, %v1914_v22, %v1916_v23  ;;  %2872 = vmatpush1.msk.msra.mxu1 %vm68_vm0, %v1920_v21  ;;  %2862 = vmatmul.mubr.msk.f32.vlgmr.msra.gmra.mxu0 %vm61_vm2, %v35_v20 }
  0xbc   :  { %2967 = vmatpush3.msk.msra.mxu0 %vm68_vm0, %v1651_v14  ;;  %1815 = vmatprep.mubr.f32.mxu1 %v3582_v2  ;;  %v1918_v26 = vpop.permute.xlu0 %1917 }
  0xbd   :  { %1738 = vmatprep.mubr.f32.mxu0 %v3582_v2  ;;  %v1924_v27 = vsel %vm1919_vm8, %v1916_v23, %v1918_v26  ;;  %2875 = vmatprep.subr.msk.mxu0 %vm68_vm0, %v1923_v24 }
  0xbe   :  { %v2183_v28 = vpop.permute.xlu1 %2182  ;;  %2867 = vmatmul.mubr.msk.f32.gmra.mxu1 %vm61_vm2, %v36_v25  ;;  %2971 = vmatprep.subr.msk.mxu1 %vm68_vm0, %v1924_v27 }
  0xbf   :  { %2863 = vmatmul.mubr.msk.f32.gmra.mxu0 %vm61_vm2, %v36_v25  ;;  %2005 = vmatprep.mubr.f32.mxu1 %v3582_v2 }
  0xc0   :  { %2968 = vmatprep.mubr.msk.f32.mxu0 %vm61_vm2, %v35_v20  ;;  %v2185_v30 = vpop.permute.xlu0 %2184 }
  0xc1   :  { %v2194_v32 = vsel %vm2192_vm9, %v2183_v28, %v2185_v30 }
  0xc2   :  { %v2187_v31 = vpop.permute.xlu1 %2186  ;;  %2873 = vmatmul.mubr.msk.f32.vlgmr.msra.gmra.mxu1 %vm61_vm2, %v37_v29 }
  0xc3   :  { %2972 = vmatpush3.msk.msra.mxu1 %vm68_vm0, %v1924_v27  ;;  %2969 = vmatmul.mubr.msk.f32.vlgmr.msra.gmra.mxu0 %vm61_vm2, %v36_v25  ;;  %v2195_v39 = vsel %vm2192_vm9, %v2185_v30, %v2187_v31 }
  0xc4   :  { %2876 = vmatpush1.msk.msra.mxu0 %vm68_vm0, %v1922_v33  ;;  %2011 = vmatprep.mubr.f32.mxu1 %v3582_v2  ;;  %v2189_v35 = vpop.permute.xlu0 %2188 }
  0xc5   :  { %2882 = vmatprep.subr.msk.mxu0 %vm68_vm0, %v2194_v32  ;;  %2082 = vmatprep.mubr.f32.mxu0 %v3582_v2  ;;  %v2196_v36 = vsel %vm2192_vm9, %v2187_v31, %v2189_v35 }
  0xc6   :  { %v2181_v37 = vpop.permute.xlu1 %2180  ;;  %2874 = vmatmul.mubr.msk.f32.gmra.mxu1 %vm61_vm2, %v38_v34  ;;  %2886 = vmatprep.subr.msk.mxu1 %vm68_vm0, %v2196_v36 }
  0xc7   :  { %v2193_v38 = vsel %vm2192_vm9, %v2181_v37, %v2183_v28  ;;  %2877 = vmatmul.mubr.msk.f32.vlgmr.msra.gmra.mxu0 %vm61_vm2, %v37_v29  ;;  %2973 = vmatprep.mubr.msk.f32.mxu1 %vm61_vm2, %v37_v29 }
  0xc8   :  { %2883 = vmatpush1.msk.msra.mxu0 %vm68_vm0, %v2193_v38  ;;  %2088 = vmatprep.mubr.f32.mxu0 %v3582_v2  ;;  %v2191_v40 = vpop.permute.xlu0 %2190 }
  0xc9   :  { %v2197_v41 = vsel %vm2192_vm9, %v2189_v35, %v2191_v40 }
  0xca   :  { %2974 = vmatmul.mubr.msk.f32.vlgmr.msra.gmra.mxu1 %vm61_vm2, %v38_v34  ;;  %2976 = vmatprep.subr.msk.mxu0 %vm68_vm0, %v2197_v41 }
  0xcb   :  { %2887 = vmatpush1.msk.msra.mxu1 %vm68_vm0, %v2195_v39  ;;  %2878 = vmatmul.mubr.msk.f32.gmra.mxu0 %vm61_vm2, %v38_v34 }
  0xcc   :  { %2355 = vmatprep.mubr.f32.mxu1 %v3582_v2  ;;  %2278 = vmatprep.mubr.f32.mxu0 %v3582_v2 }
  0xce   :  { %2888 = vmatmul.mubr.msk.f32.vlgmr.msra.gmra.mxu1 %vm61_vm2, %v39_v42 }
  0xcf   :  { %2884 = vmatmul.mubr.msk.f32.vlgmr.msra.gmra.mxu0 %vm61_vm2, %v39_v42  ;;  %2361 = vmatprep.mubr.f32.mxu1 %v3582_v2 }
  0xd0   :  { %2977 = vmatpush3.msk.msra.mxu0 %vm68_vm0, %v2197_v41  ;;  %2284 = vmatprep.mubr.f32.mxu0 %v3582_v2 }
  0xd2   :  { %2889 = vmatmul.mubr.msk.f32.gmra.mxu1 %vm61_vm2, %v40_v43 }
  0xd3   :  { %2885 = vmatmul.mubr.msk.f32.gmra.mxu0 %vm61_vm2, %v40_v43  ;;  %2620 = vmatprep.mubr.f32.mxu1 %v3582_v2 }
  0xd4   :  { %2978 = vmatprep.mubr.msk.f32.mxu0 %vm61_vm2, %v39_v42 }
  0xd7   :  { %2979 = vmatmul.mubr.msk.f32.vlgmr.msra.gmra.mxu0 %vm61_vm2, %v40_v43 }
  0xd8   :  { %2691 = vmatprep.mubr.f32.mxu0 %v3582_v2 }
 0x13e   :  { %v3413_v44 = vpop.f32.mrf.mxu1 }
 0x13f   :  { %v145_v45 = vpop.f32.mrf.mxu0 }
 0x140   :  { %v3415_v46 = vpop.f32.mrf.mxu1 }
 0x141   :  { %v147_v49 = vpop.f32.mrf.mxu0 }
 0x142   :  { %v3417_v50 = vpop.f32.mrf.mxu1 }
 0x143   :  { %v3419_v51 = vpop.f32.mrf.mxu0 }
 0x144   :  { %v3421_v53 = vpop.f32.mrf.mxu1 }
 0x145   :  { %v3423_v54 = vpop.f32.mrf.mxu0 }
 0x146   :  { %v390_v56 = vpop.f32.mrf.mxu1 }
 0x147   :  { %v3425_v57 = vadd.f32 %v390_v56, %v145_v45  ;;  %v3427_v59 = vpop.f32.mrf.mxu0 }
 0x148   :  { %v392_v60 = vpop.f32.mrf.mxu1 }
 0x149   :  { %v3429_v61 = vadd.f32 %v392_v60, %v147_v49  ;;  %v3431_v62 = vpop.f32.mrf.mxu0 }
 0x14a   :  { %v396_v63 = vpop.f32.mrf.mxu1 }
 0x14b   :  { %v467_v0 = vpop.f32.mrf.mxu0 }
 0x14c   :  { %v398_v1 = vpop.f32.mrf.mxu1 }
 0x14d   :  { %v469_v3 = vpop.f32.mrf.mxu0 }
 0x14e   :  { %v2945_v4 = vpop.f32.mrf.mxu1 }
 0x14f   :  { %v473_v5 = vpop.f32.mrf.mxu0 }
 0x150   :  { %v544_v6 = vpop.f32.mrf.mxu1 }
 0x151   :  { %v475_v7 = vpop.f32.mrf.mxu0 }
 0x152   :  { %v727_v8 = vpop.f32.mrf.mxu1 }
 0x153   :  { %v650_v9 = vpop.f32.mrf.mxu0 }
 0x154   :  { %v729_v10 = vpop.f32.mrf.mxu1 }
 0x155   :  { %v652_v11 = vpop.f32.mrf.mxu0 }
 0x156   :  { %v733_v12 = vpop.f32.mrf.mxu1 }
 0x157   :  { %v656_v13 = vpop.f32.mrf.mxu0 }
 0x158   :  { %v735_v14 = vpop.f32.mrf.mxu1 }
 0x159   :  { %v658_v15 = vpop.f32.mrf.mxu0 }
 0x15a   :  { %v920_v16 = vpop.f32.mrf.mxu1 }
 0x15b   :  { %v2950_v17 = vpop.f32.mrf.mxu0 }
 0x15c   :  { %v922_v18 = vpop.f32.mrf.mxu1 }
 0x15d   :  { %v804_v19 = vpop.f32.mrf.mxu0 }
 0x15e   :  { %v926_v20 = vpop.f32.mrf.mxu1 }
 0x15f   :  { %v997_v21 = vpop.f32.mrf.mxu0 }
 0x160   :  { %v928_v22 = vpop.f32.mrf.mxu1 }
 0x161   :  { %v999_v23 = vpop.f32.mrf.mxu0 }
 0x162   :  { %v2955_v24 = vpop.f32.mrf.mxu1 }
 0x163   :  { %v1003_v25 = vpop.f32.mrf.mxu0 }
 0x164   :  { %v3433_v26 = vpop.f32.mrf.mxu1 }
 0x165   :  { %v3435_v27 = vpop.f32.mrf.mxu0 }
 0x166   :  { %v1267_v28 = vpop.f32.mrf.mxu1 }
 0x167   :  { %v1190_v29 = vpop.f32.mrf.mxu0 }
 0x168   :  { %v1269_v30 = vpop.f32.mrf.mxu1 }
 0x169   :  { %v3437_v31 = vpop.f32.mrf.mxu0 }
 0x16a   :  { %v3439_v32 = vpop.f32.mrf.mxu1 }
 0x16b   :  { %v3441_v33 = vpop.f32.mrf.mxu0 }
 0x16c   :  { %v3443_v34 = vpop.f32.mrf.mxu1 }
 0x16d   :  { %v3445_v35 = vpop.f32.mrf.mxu0 }
 0x16e   :  { %v3447_v36 = vpop.f32.mrf.mxu1 }
 0x16f   :  { %v3449_v37 = vpop.f32.mrf.mxu0 }
 0x170   :  { %v3451_v38 = vpop.f32.mrf.mxu1 }
 0x171   :  { %v3453_v39 = vpop.f32.mrf.mxu0 }
 0x172   :  { %v3455_v40 = vpop.f32.mrf.mxu1 }
 0x173   :  { %3594 = vst [vmem:[#allocation7_spill] sm:$0xff] %v3455_v40  ;;  %v1537_v41 = vpop.f32.mrf.mxu0 }
 0x174   :  { %v3457_v42 = vpop.f32.mrf.mxu1 }
 0x175   :  { %3595 = vst [vmem:[#allocation8_spill] sm:$0xff] %v3457_v42  ;;  %v3459_v43 = vpop.f32.mrf.mxu0 }
 0x176   :  { %v3461_v45 = vpop.f32.mrf.mxu1 }
 0x177   :  { %3596 = vst [vmem:[#allocation9_spill] sm:$0xff] %v3461_v45  ;;  %v3463_v49 = vpop.f32.mrf.mxu0  ;;  %v397_v45 = vadd.f32 %v396_v63, %v3419_v51  ;;  %v813_v51 = vadd.f32 %v650_v9, %v3425_v57 }
 0x178   :  { %3597 = vst [vmem:[#allocation10_spill] sm:$0xff] %v3463_v49  ;;  %v3465_v56 = vpop.f32.mrf.mxu1  ;;  %v468_v49 = vadd.f32 %v467_v0, %v3413_v44 }
 0x179   :  { %3598 = vst [vmem:[#allocation11_spill] sm:$0xff] %v3465_v56  ;;  %v3467_v60 = vpop.f32.mrf.mxu0  ;;  %v470_v56 = vadd.f32 %v469_v3, %v3415_v46  ;;  %v814_v46 = vadd.f32 %v652_v11, %v3429_v61  ;;  %v818_v3 = vadd.f32 %v656_v13, %v397_v45 }
 0x17a   :  { %3599 = vst [vmem:[#allocation12_spill] sm:$0xff] %v3467_v60  ;;  %v1811_v2 = vpop.f32.mrf.mxu1 }
 0x17b   :  { %v3469_v47 = vpop.f32.mrf.mxu0  ;;  %v816_v63 = vadd.f32 %v729_v10, %v470_v56 }
 0x17c   :  { %3600 = vst [vmem:[#allocation13_spill] sm:$0xff] %v3469_v47  ;;  %v3471_v52 = vpop.f32.mrf.mxu1  ;;  %v399_v47 = vadd.f32 %v398_v1, %v3423_v54 }
 0x17d   :  { %3601 = vst [vmem:[#allocation14_spill] sm:$0xff] %v3471_v52  ;;  %v3473_v55 = vpop.f32.mrf.mxu0  ;;  %v550_v52 = vadd.f32 %v2945_v4, %v3427_v59  ;;  %v1083_v4 = vadd.f32 %v920_v16, %v813_v51 }
 0x17e   :  { %3602 = vst [vmem:[#allocation15_spill] sm:$0xff] %v3473_v55  ;;  %v3475_v48 = vpop.f32.mrf.mxu1  ;;  %v474_v55 = vadd.f32 %v473_v5, %v3417_v50  ;;  %v819_v59 = vadd.f32 %v658_v15, %v399_v47 }
 0x17f   :  { %3603 = vst [vmem:[#allocation16_spill] sm:$0xff] %v3475_v48  ;;  %v3477_v58 = vpop.f32.mrf.mxu0  ;;  %v476_v48 = vadd.f32 %v475_v7, %v3421_v53  ;;  %v822_v50 = vadd.f32 %v2950_v17, %v550_v52  ;;  %v1084_v7 = vadd.f32 %v922_v18, %v814_v46  ;;  %v1353_v61 = vadd.f32 %v1190_v29, %v1083_v4  ;;  %v3609_v29 = vld [vmem:[#allocation10_spill] sm:$0xff] }
 0x180   :  { %3604 = vst [vmem:[#allocation17_spill] sm:$0xff] %v3477_v58  ;;  %v3479_v42 = vpop.f32.mrf.mxu1  ;;  %v545_v58 = vadd.f32 %v544_v6, %v3431_v62  ;;  %v820_v0 = vadd.f32 %v733_v12, %v474_v55  ;;  %v1088_v62 = vadd.f32 %v926_v20, %v818_v3  ;;  %v1086_v6 = vadd.f32 %v999_v23, %v816_v63  ;;  %v2458_v3 = vpop.permute.xlu0 %2457 }
 0x181   :  { %3605 = vst [vmem:[#allocation18_spill] sm:$0xff] %v3479_v42  ;;  %v3484_v60 = vpop.f32.mrf.mxu0  ;;  %v815_v42 = vadd.f32 %v727_v8, %v468_v49  ;;  %v821_v54 = vadd.f32 %v735_v14, %v476_v48  ;;  %v1089_v57 = vadd.f32 %v928_v22, %v819_v59  ;;  %v1092_v9 = vadd.f32 %v2955_v24, %v822_v50 }
 0x182   :  { %3606 = vst [vmem:[#allocation19_spill] sm:$0xff] %v3484_v60  ;;  %v2007_v40 = vpop.f32.mrf.mxu1  ;;  %v817_v60 = vadd.f32 %v804_v19, %v545_v58  ;;  %v1090_v10 = vadd.f32 %v1003_v25, %v820_v0  ;;  %v1356_v47 = vadd.f32 %v1269_v30, %v1086_v6  ;;  %v1354_v52 = vadd.f32 %v3437_v31, %v1084_v7  ;;  %v3607_v25 = vld [vmem:[#allocation7_spill] sm:$0xff] }
 0x183   :  { %v3492_v44 = vpop.f32.mrf.mxu0  ;;  %v1085_v5 = vadd.f32 %v997_v21, %v815_v42  ;;  %v1091_v48 = vadd.f32 %v3435_v27, %v821_v54  ;;  %v1358_v58 = vadd.f32 %v3441_v33, %v1088_v62  ;;  %v1359_v16 = vadd.f32 %v3445_v35, %v1089_v57  ;;  %v3608_v27 = vld [vmem:[#allocation8_spill] sm:$0xff]  ;;  %v3610_v31 = vld [vmem:[#allocation13_spill] sm:$0xff] }
 0x184   :  { %v2009_v1 = vpop.f32.mrf.mxu1  ;;  %v1087_v55 = vadd.f32 %v3433_v26, %v817_v60  ;;  %v1360_v12 = vadd.f32 %v3439_v32, %v1090_v10  ;;  %v1623_v17 = vadd.f32 %v3447_v36, %v1353_v61  ;;  %v1362_v18 = vadd.f32 %v3449_v37, %v1092_v9  ;;  %v3612_v36 = vld [vmem:[#allocation12_spill] sm:$0xff] }
 0x185   :  { %v1888_v53 = vpop.f32.mrf.mxu0  ;;  %v1355_v49 = vadd.f32 %v1267_v28, %v1085_v5  ;;  %v1361_v15 = vadd.f32 %v3443_v34, %v1091_v48  ;;  %v1624_v20 = vadd.f32 %v3451_v38, %v1354_v52  ;;  %v1626_v22 = vadd.f32 %v3459_v43, %v1356_v47  ;;  %v3611_v34 = vld [vmem:[#allocation9_spill] sm:$0xff]  ;;  %v3613_v38 = vld [vmem:[#allocation14_spill] sm:$0xff]  ;;  %v3614_v43 = vld [vmem:[#allocation11_spill] sm:$0xff] }
 0x186   :  { %v2013_v8 = vpop.f32.mrf.mxu1  ;;  %v1357_v21 = vadd.f32 %v3453_v39, %v1087_v55  ;;  %v1628_v26 = vadd.f32 %v3607_v25, %v1358_v58  ;;  %v1629_v28 = vadd.f32 %v3608_v27, %v1359_v16  ;;  %v1630_v30 = vadd.f32 %v3609_v29, %v1360_v12  ;;  %v3615_v45 = vld [vmem:[#allocation15_spill] sm:$0xff]  ;;  %v3616_v51 = vld [vmem:[#allocation16_spill] sm:$0xff] }
 0x187   :  { %v2084_v56 = vpop.f32.mrf.mxu0  ;;  %v1625_v13 = vadd.f32 %v1537_v41, %v1355_v49  ;;  %v1897_v32 = vadd.f32 %v3610_v31, %v1623_v17  ;;  %v1632_v35 = vadd.f32 %v3611_v34, %v1362_v18  ;;  %v1631_v37 = vadd.f32 %v3612_v36, %v1361_v15  ;;  %v3617_v54 = vld [vmem:[#allocation17_spill] sm:$0xff]  ;;  %v2463_v15 = vpop.permute.xlu1 %2462 }
 0x188   :  { %v2015_v11 = vpop.f32.mrf.mxu1  ;;  %v1900_v41 = vadd.f32 %v3613_v38, %v1626_v22  ;;  %v1898_v60 = vadd.f32 %v3615_v45, %v1624_v20  ;;  %v1904_v63 = vadd.f32 %v3616_v51, %v1630_v30  ;;  %v1902_v59 = vadd.f32 %v3617_v54, %v1628_v26  ;;  %v3618_v4 = vld [vmem:[#allocation18_spill] sm:$0xff] }
 0x189   :  { %v2086_v14 = vpop.f32.mrf.mxu0  ;;  %v1899_v23 = vadd.f32 %v1811_v2, %v1625_v13  ;;  %v1627_v2 = vadd.f32 %v3614_v43, %v1357_v21  ;;  %v2170_v46 = vadd.f32 %v2007_v40, %v1897_v32  ;;  %v1905_v50 = vadd.f32 %v3618_v4, %v1631_v37  ;;  %v3619_v6 = vld [vmem:[#allocation19_spill] sm:$0xff] }
 0x18a   :  { %v2975_v19 = vpop.f32.mrf.mxu1  ;;  %v2173_v5 = vadd.f32 %v2086_v14, %v1900_v41  ;;  %v1903_v57 = vadd.f32 %v3619_v6, %v1629_v28  ;;  %v1906_v9 = vadd.f32 %v3492_v44, %v1632_v35  ;;  %v2171_v10 = vadd.f32 %v2009_v1, %v1898_v60 }
 0x18b   :  { %v2090_v24 = vpop.f32.mrf.mxu0  ;;  %v2172_v39 = vadd.f32 %v2084_v56, %v1899_v23  ;;  %v1901_v55 = vadd.f32 %v1888_v53, %v1627_v2  ;;  %v2175_v52 = vadd.f32 %v2013_v8, %v1902_v59 }
 0x18c   :  { %v2161_v33 = vpop.f32.mrf.mxu1  ;;  %v2177_v48 = vadd.f32 %v2090_v24, %v1904_v63  ;;  %v2176_v12 = vadd.f32 %v2015_v11, %v1903_v57  ;;  %v2179_v53 = vadd.f32 %v2975_v19, %v1906_v9 }
 0x18d   :  { %v2092_v42 = vpop.f32.mrf.mxu0  ;;  %v2174_v19 = vadd.f32 %v2161_v33, %v1901_v55 }
 0x18e   :  { %v2357_v0 = vpop.f32.mrf.mxu1  ;;  %v2178_v16 = vadd.f32 %v2092_v42, %v1905_v50 }
 0x18f   :  { %v2445_v7 = vadd.f32 %v2357_v0, %v2172_v39  ;;  %v2280_v62 = vpop.f32.mrf.mxu0 }
 0x190   :  { %v2443_v49 = vadd.f32 %v2280_v62, %v2170_v46  ;;  %v2359_v56 = vpop.f32.mrf.mxu1 }
 0x191   :  { %v3521_v61 = vadd.f32 %v2458_v3, %v2445_v7  ;;  %v2446_v40 = vadd.f32 %v2359_v56, %v2173_v5  ;;  %v2282_v47 = vpop.f32.mrf.mxu0 }
 0x192   :  { %v3523_v58 = vadd.f32 %v2458_v3, %v2443_v49  ;;  %v2444_v13 = vadd.f32 %v2282_v47, %v2171_v10  ;;  %v2363_v14 = vpop.f32.mrf.mxu1 }
 0x193   :  { %v2895_v17 = vmul.f32 -1.442695, %v3521_v61  ;;  %v3526_v44 = vadd.f32 %v2458_v3, %v2446_v40  ;;  %v2450_v1 = vadd.f32 %v2363_v14, %v2177_v48  ;;  %v2286_v18 = vpop.f32.mrf.mxu0 }
 0x194   :  { %v2893_v20 = vmul.f32 -1.442695, %v3523_v58  ;;  %v3529_v21 = vadd.f32 %v2458_v3, %v2444_v13  ;;  %v2448_v22 = vadd.f32 %v2286_v18, %v2175_v52  ;;  %v2365_v8 = vpop.f32.mrf.mxu1 }
 0x195   :  { %3004 = vpow2.f32 %v2895_v17  ;;  %v2896_v11 = vmul.f32 -1.442695, %v3526_v44  ;;  %v3532_v23 = vadd.f32 %v2463_v15, %v2450_v1  ;;  %v2451_v24 = vadd.f32 %v2365_v8, %v2178_v16  ;;  %v2288_v25 = vpop.f32.mrf.mxu0 }
 0x196   :  { %3006 = vpow2.f32 %v2893_v20  ;;  %v2894_v26 = vmul.f32 -1.442695, %v3529_v21  ;;  %v3535_v27 = vadd.f32 %v2463_v15, %v2448_v22  ;;  %v2449_v28 = vadd.f32 %v2288_v25, %v2176_v12  ;;  %v2545_v22 = vld [vmem:[%s3580_s3] sm:$0xf] }
 0x197   :  { %3008 = vpow2.f32 %v2896_v11  ;;  %v2900_v29 = vmul.f32 -1.442695, %v3532_v23  ;;  %v2473_v30 = vadd.f32 %v2463_v15, %v2451_v24  ;;  %v2980_v31 = vpop.f32.mrf.mxu0 }
 0x198   :  { %3010 = vpow2.f32 %v2894_v26  ;;  %v2898_v32 = vmul.f32 -1.442695, %v3535_v27  ;;  %v2471_v34 = vadd.f32 %v2463_v15, %v2449_v28  ;;  %v2452_v35 = vadd.f32 %v2980_v31, %v2179_v53 }
 0x199   :  { %3012 = vpow2.f32 %v2900_v29  ;;  %v2901_v36 = vmul.f32 -1.442695, %v2473_v30  ;;  %v2434_v37 = vpop.f32.mrf.mxu0 }
 0x19a   :  { %3014 = vpow2.f32 %v2898_v32  ;;  %v2899_v38 = vmul.f32 -1.442695, %v2471_v34  ;;  %v3539_v41 = vadd.f32 %v2463_v15, %v2452_v35  ;;  %v2447_v39 = vadd.f32 %v2434_v37, %v2174_v19  ;;  %v3622_v32 = vld [vmem:[#allocation3_spill] sm:$0xff] }
 0x19b   :  { %3016 = vpow2.f32 %v2901_v36  ;;  %v3623_v36 = vld [vmem:[#allocation5_spill] sm:$0xff] }
 0x19c   :  { %3018 = vpow2.f32 %v2899_v38  ;;  %v2902_v33 = vmul.f32 -1.442695, %v3539_v41  ;;  %v3542_v42 = vadd.f32 %v2458_v3, %v2447_v39  ;;  %v3624_v38 = vld [vmem:[#allocation4_spill] sm:$0xff] }
 0x19e   :  { %3020 = vpow2.f32 %v2902_v33  ;;  %v2897_v43 = vmul.f32 -1.442695, %v3542_v42 }
 0x1a0   :  { %3022 = vpow2.f32 %v2897_v43 }
 0x1a2   :  { %v3005_v2 = vpop.eup %3004 }
 0x1a3   :  { %v3007_v45 = vpop.eup %3006  ;;  %v2507_v60 = vadd.f32 1.0, %v3005_v2  ;;  %v3625_v2 = vld [vmem:[#allocation2_spill] sm:$0xff] }
 0x1a4   :  { %v3009_v51 = vpop.eup %3008  ;;  %v2505_v7 = vadd.f32 1.0, %v3007_v45 }
 0x1a5   :  { %v3011_v63 = vpop.eup %3010  ;;  %v2508_v46 = vadd.f32 1.0, %v3009_v51  ;;  %3024 = vrcp.f32 %v2507_v60 }
 0x1a6   :  { %v3013_v0 = vpop.eup %3012  ;;  %v2506_v54 = vadd.f32 1.0, %v3011_v63 }
 0x1a7   :  { %v3015_v59 = vpop.eup %3014  ;;  %3026 = vrcp.f32 %v2508_v46  ;;  %v2512_v4 = vadd.f32 1.0, %v3013_v0 }
 0x1a8   :  { %v3017_v50 = vpop.eup %3016  ;;  %3028 = vrcp.f32 %v2506_v54  ;;  %v2510_v3 = vadd.f32 1.0, %v3015_v59 }
 0x1a9   :  { %v3019_v5 = vpop.eup %3018  ;;  %3030 = vrcp.f32 %v2512_v4  ;;  %v2513_v62 = vadd.f32 1.0, %v3017_v50 }
 0x1aa   :  { %3032 = vrcp.f32 %v2510_v3  ;;  %v2511_v6 = vadd.f32 1.0, %v3019_v5 }
 0x1ab   :  { %v3021_v57 = vpop.eup %3020  ;;  %3034 = vrcp.f32 %v2513_v62 }
 0x1ac   :  { %3036 = vrcp.f32 %v2511_v6  ;;  %v2514_v9 = vadd.f32 1.0, %v3021_v57 }
 0x1ad   :  { %v3023_v10 = vpop.eup %3022  ;;  %3038 = vrcp.f32 %v2505_v7 }
 0x1ae   :  { %v2509_v49 = vadd.f32 1.0, %v3023_v10  ;;  %3040 = vrcp.f32 %v2514_v9 }
 0x1b0   :  { %3042 = vrcp.f32 %v2509_v49 }
 0x1b2   :  { %v3025_v56 = vpop.eup %3024 }
 0x1b3   :  { %v2537_v20 = vmul.f32 %v3025_v56, %v3521_v61  ;;  %v3620_v61 = vmov 0.0  }
 0x1b4   :  { %v3027_v55 = vpop.eup %3026 }
 0x1b5   :  { %v3029_v48 = vpop.eup %3028  ;;  %v2538_v1 = vmul.f32 %v3027_v55, %v3526_v44 }
 0x1b6   :  { %v3031_v40 = vpop.eup %3030  ;;  %v2536_v53 = vmul.f32 %v3029_v48, %v3529_v21 }
 0x1b7   :  { %v3033_v47 = vpop.eup %3032  ;;  %v2542_v16 = vmul.f32 %v3031_v40, %v3532_v23 }
 0x1b8   :  { %v3035_v52 = vpop.eup %3034  ;;  %v2540_v17 = vmul.f32 %v3033_v47, %v3535_v27 }
 0x1b9   :  { %v3037_v12 = vpop.eup %3036  ;;  %v2543_v13 = vmul.f32 %v3035_v52, %v2473_v30  ;;  %v3621_v30 = vld [vmem:[#allocation6_spill] sm:$0xff] }
 0x1ba   :  { %v3039_v14 = vpop.eup %3038  ;;  %v2541_v15 = vmul.f32 %v3037_v12, %v2471_v34 }
 0x1bb   :  { %2655 = vmatprep.subr.mxu0 %v2543_v13  ;;  %v3041_v18 = vpop.eup %3040  ;;  %v2535_v8 = vmul.f32 %v3039_v14, %v3523_v58  ;;  %v2550_v58 = vpop.permute.xlu1 %2549 }
 0x1bc   :  { %2584 = vmatprep.subr.mxu1 %v2541_v15  ;;  %2656 = vmatpush1.msra.mxu0 %v2542_v16  ;;  %v2544_v44 = vmul.f32 %v3041_v18, %v3539_v41 }
 0x1bd   :  { %2585 = vmatpush1.msra.mxu1 %v2540_v17  ;;  %2657 = vmatprep.subr.mxu0 %v2538_v1  ;;  %v3043_v11 = vpop.eup %3042 }
 0x1be   :  { %2586 = vmatprep.subr.mxu1 %v2536_v53  ;;  %2658 = vmatpush1.msra.mxu0 %v2537_v20  ;;  %v2539_v21 = vmul.f32 %v3043_v11, %v3542_v42 }
 0x1bf   :  { %2587 = vmatpush1.msra.mxu1 %v2535_v8  ;;  %2904 = vmatmul.mubr.msk.f32.vlgmr.msra.gmra.mxu0 %vm2552_vm10, %v2545_v22 }
 0x1c0   :  { %2903 = vmatmul.mubr.msk.f32.vlgmr.msra.gmra.mxu1 %vm2552_vm10, %v2545_v22  ;;  %2981 = vmatprep.subr.mxu1 %v3620_v61 }
 0x1c1   :  { %2982 = vmatpush3.msra.mxu1 %v2544_v44  ;;  %2985 = vmatprep.mubr.msk.f32.mxu1 %vm3054_vm11, %v3620_v61 }
 0x1c2   :  { %2983 = vmatprep.subr.mxu1 %v3620_v61 }
 0x1c3   :  { %2984 = vmatpush3.msra.mxu1 %v2539_v21 }
 0x1c4   :  { %2986 = vmatmul.mubr.msk.f32.vlgmr.msra.gmra.mxu1 %vm2552_vm10, %v2545_v22 }
 0x27f   :  { %v2693_v23 = vpop.f32.mrf.mxu0 }
 0x280   :  { %v2694_v24 = vadd.f32 %v2693_v23, %v2550_v58  ;;  %v2622_v25 = vpop.f32.mrf.mxu1 }
 0x281   :  { %v2623_v26 = vadd.f32 %v2622_v25, %v2550_v58  ;;  %v2695_v27 = vpop.f32.mrf.mxu0 }
 0x282   :  { %v2696_v28 = vadd.f32 %v2695_v27, %v2550_v58  ;;  %v2624_v19 = vpop.f32.mrf.mxu1  ;;  %v2775_v31 = vadd.f32 %v2694_v24, %v3621_v30 }
 0x283   :  { %v2625_v29 = vadd.f32 %v2624_v19, %v2550_v58  ;;  %v2773_v37 = vadd.f32 %v2623_v26, %v3623_v36 }
 0x284   :  { %v2776_v34 = vadd.f32 %v2696_v28, %v3622_v32  ;;  %v2764_v35 = vpop.f32.mrf.mxu1 }
 0x285   :  { %v2774_v41 = vadd.f32 %v2625_v29, %v3624_v38  ;;  %v2765_v39 = vadd.f32 %v2764_v35, %v2550_v58 }
 0x286   :  { %v2783_v33 = vcombine.low %v2775_v31, %v2776_v34  ;;  %v2987_v42 = vpop.f32.mrf.mxu1 }
 0x287   :  { %v2782_v43 = vcombine.low %v2773_v37, %v2774_v41  ;;  %v2777_v45 = vadd.f32 %v2765_v39, %v3625_v2 }
 0x288   :  { %2787 = vst [vmem:[%s3581_s5 + $0x8] sm:$0xff] %v2783_v33 }
 0x289   :  { %2786 = vst [vmem:[%s3581_s5] sm:$0xff] %v2782_v43  ;;  %2789 = vst.msk [vmem:[%s3581_s5 + $0x10] sm:$0xf] %vm2788_vm12, %v2777_v45 }

</bundles_post_ra>
